<compile_context>
chip_gen: v5e
topology: v5e:2x2
jax: 0.10.0
libtpu: 0.0.40
codegen_flags: <defaults>
</compile_context>

<pallas_src>
import functools

import jax
import jax.numpy as jnp
from jax.experimental import pallas as pl
from jax.experimental.pallas import tpu as pltpu

LN_EPS = 1e-5
LANE = 128


def _round_up(x, m):
    return (x + m - 1) // m * m


def _ln_relu(h, gamma, beta, n_true):
    """Single-pass LayerNorm over the last axis (eps=1e-5, affine) + ReLU.

    `h` may be zero-padded past `n_true` lanes; the zero pad lanes contribute
    nothing to sum / sum-of-squares, and gamma=beta=0 there makes the padded
    output exactly 0 after ReLU.
    """
    inv_n = 1.0 / n_true
    s = jnp.sum(h, axis=-1, keepdims=True)
    ss = jnp.sum(h * h, axis=-1, keepdims=True)
    mu = s * inv_n
    var = ss * inv_n - mu * mu
    hn = (h - mu) * jax.lax.rsqrt(var + LN_EPS)
    return jnp.maximum(hn * gamma + beta, 0.0)


def minesweeper_mlp_kernel(x_ref, w1_ref, w2_ref, w3_ref, w4_ref, vec_ref,
                           o_ref, *, h_true, h2_true, o_true):
    """One batch tile through the whole MLP. Dropout = identity (eval mode)."""
    Hp = w1_ref.shape[1]    # 128 (padded)
    H2p = w2_ref.shape[1]   # 128 (padded)
    Op = w4_ref.shape[1]    # 256

    vecs = vec_ref[...]  # (10, VW) f32 slab; every slice below is 128-lane aligned
    b1, g1, be1 = vecs[0:1, :Hp], vecs[1:2, :Hp], vecs[2:3, :Hp]
    b2, g2, be2 = vecs[3:4, :H2p], vecs[4:5, :H2p], vecs[5:6, :H2p]
    b3, g3, be3 = vecs[6:7, :Op], vecs[7:8, :Op], vecs[8:9, :Op]
    b4 = vecs[9:10, :Op]

    x = x_ref[...]

    # Block 1: Linear -> LayerNorm -> ReLU   (Dropout = identity in eval)
    h = jnp.dot(x.astype(jnp.bfloat16), w1_ref[...],
                preferred_element_type=jnp.float32) + b1
    h = _ln_relu(h, g1, be1, h_true)

    # Block 2: Linear -> LayerNorm -> ReLU
    h = jnp.dot(h.astype(jnp.bfloat16), w2_ref[...],
                preferred_element_type=jnp.float32) + b2
    h = _ln_relu(h, g2, be2, h2_true)

    # Block 3: Linear -> LayerNorm -> ReLU
    h = jnp.dot(h.astype(jnp.bfloat16), w3_ref[...],
                preferred_element_type=jnp.float32) + b3
    h = _ln_relu(h, g3, be3, o_true)

    # Output head: Linear only
    o_ref[...] = jnp.dot(h.astype(jnp.bfloat16), w4_ref[...],
                         preferred_element_type=jnp.float32) + b4


def init_params(key, input_size, hidden_size):
    """Matches MinesweeperNet._init_weights: kaiming_normal_(relu) Linear weights
    (std = sqrt(2/fan_in)), zero bias; LayerNorm gamma=1, beta=0.
    Returns raw, unpadded f32 params (weights pre-transposed to (in, out))."""
    dims = [
        (input_size, hidden_size),
        (hidden_size, hidden_size * 2),
        (hidden_size * 2, input_size // 2),
        (input_size // 2, input_size // 2),
    ]
    raw = {}
    for idx, (fan_in, fan_out) in enumerate(dims, start=1):
        key, wk = jax.random.split(key)
        std = (2.0 / fan_in) ** 0.5
        raw[f"w{idx}"] = std * jax.random.normal(wk, (fan_in, fan_out), jnp.float32)
        raw[f"b{idx}"] = jnp.zeros((fan_out,), jnp.float32)
    widths = [hidden_size, hidden_size * 2, input_size // 2]
    for idx, width in enumerate(widths, start=1):
        raw[f"g{idx}"] = jnp.ones((width,), jnp.float32)
        raw[f"be{idx}"] = jnp.zeros((width,), jnp.float32)
    return raw


def prepare_params(raw):
    """Pad the narrow hidden dims to full 128-lane tiles, cast weights to bf16,
    and pack the 10 bias/LN vectors into one lane-dense f32 slab.

    Pad-lane invariants (keep LayerNorm exact with inv_n = 1/true_width):
      * padded weight rows / columns are zero,
      * padded bias / gamma / beta lanes are zero (gamma=0 => ReLU output 0).
    Slab rows: 0 b1, 1 g1, 2 be1, 3 b2, 4 g2, 5 be2, 6 b3, 7 g3, 8 be3, 9 b4.
    """
    IN, H = raw["w1"].shape
    H2 = raw["w2"].shape[1]
    O = raw["w4"].shape[1]
    Hp, H2p, Op = _round_up(H, LANE), _round_up(H2, LANE), _round_up(O, LANE)

    def pad2(w, rows, cols):
        return jnp.pad(w, ((0, rows - w.shape[0]), (0, cols - w.shape[1])))

    w1 = pad2(raw["w1"], IN, Hp).astype(jnp.bfloat16)
    w2 = pad2(raw["w2"], Hp, H2p).astype(jnp.bfloat16)
    w3 = pad2(raw["w3"], H2p, Op).astype(jnp.bfloat16)
    w4 = pad2(raw["w4"], Op, Op).astype(jnp.bfloat16)

    VW = max(Hp, H2p, Op)
    rows = [raw["b1"], raw["g1"], raw["be1"],
            raw["b2"], raw["g2"], raw["be2"],
            raw["b3"], raw["g3"], raw["be3"],
            raw["b4"]]
    vecs = jnp.zeros((10, VW), jnp.float32)
    for r, v in enumerate(rows):
        vecs = vecs.at[r, :v.shape[0]].set(v)

    return (w1, w2, w3, w4, vecs), (H, H2, O)


@functools.partial(jax.jit, static_argnames=("true_dims",))
def minesweeper_forward(x, params, *, true_dims):
    """Eval-mode forward. x: (B, input_size) or (input_size,) float32."""
    h_true, h2_true, o_true = true_dims
    squeeze_out = False
    if x.ndim == 1:
        x = x[None, :]
    if x.shape[0] == 1:
        squeeze_out = True  # module returns output.squeeze() when batch == 1

    w1, w2, w3, w4, vecs = params
    B, IN = x.shape
    Op = w4.shape[1]

    # Batch tiling: pad rows to a sublane multiple (>=8).  Tile at up to 512
    # rows (mem-bound: ~85% of HBM roofline vs ~29% at 128-row tiles), but keep
    # >= 2 grid steps once the batch is large enough so the "parallel" grid
    # axis shards across both TensorCores on v7x.  Per-step footprint at
    # TB=512 (double-buffered f32 x/out tiles + bf16 weights) is ~5 MiB, under
    # the v5e/v6e/v7x scoped-VMEM defaults, so no vmem_limit override needed.
    B8 = _round_up(max(B, 8), 8)
    TB = min(512, _round_up(pl.cdiv(B8, 2), 8), B8)
    B_pad = _round_up(B8, TB)
    if B_pad != B:
        x = jnp.pad(x, ((0, B_pad - B), (0, 0)))

    grid = (B_pad // TB,)

    flops = 2 * B_pad * (IN * w1.shape[1] + w1.shape[1] * w2.shape[1]
                         + w2.shape[1] * w3.shape[1] + w3.shape[1] * Op)
    bytes_accessed = (
        x.size * 4 + B_pad * Op * 4 + vecs.size * 4
        + 2 * (w1.size + w2.size + w3.size + w4.size)   # bf16 weights
    )
    cost = pl.CostEstimate(flops=flops, transcendentals=3 * B_pad,
                           bytes_accessed=bytes_accessed)

    kernel = functools.partial(minesweeper_mlp_kernel,
                               h_true=h_true, h2_true=h2_true, o_true=o_true)

    out = pl.pallas_call(
        kernel,
        out_shape=jax.ShapeDtypeStruct((B_pad, Op), jnp.float32),
        grid=grid,
        in_specs=[
            pl.BlockSpec((TB, IN), lambda i: (i, 0)),       # activations: tiled
            # Resident operands (constant index maps).  Left at the default
            # pipelining: the unused second buffers cost only ~0.4 MiB here.
            pl.BlockSpec(w1.shape, lambda i: (0, 0)),
            pl.BlockSpec(w2.shape, lambda i: (0, 0)),
            pl.BlockSpec(w3.shape, lambda i: (0, 0)),
            pl.BlockSpec(w4.shape, lambda i: (0, 0)),
            pl.BlockSpec(vecs.shape, lambda i: (0, 0)),     # packed bias/LN slab
        ],
        out_specs=pl.BlockSpec((TB, Op), lambda i: (i, 0)),
        compiler_params=pltpu.CompilerParams(
            dimension_semantics=("parallel",)),
        cost_estimate=cost,
    )(x, w1, w2, w3, w4, vecs)

    out = out[:B, :o_true]
    if squeeze_out:
        out = out[0]
    return out


def _reference_forward(x, raw):
    """Plain-JAX mirror of the eval-mode forward (bf16 matmul inputs, f32 accum,
    two-pass LayerNorm), using the raw unpadded parameters."""
    if x.ndim == 1:
        x = x[None, :]

    def ln(h, g, b):
        mu = jnp.mean(h, -1, keepdims=True)
        var = jnp.mean((h - mu) ** 2, -1, keepdims=True)
        return (h - mu) / jnp.sqrt(var + LN_EPS) * g + b

    def block(h, w, b, g, be):
        y = jnp.dot(h.astype(jnp.bfloat16), w.astype(jnp.bfloat16),
                    preferred_element_type=jnp.float32) + b
        return jnp.maximum(ln(y, g, be), 0.0)

    h = block(x, raw["w1"], raw["b1"], raw["g1"], raw["be1"])
    h = block(h, raw["w2"], raw["b2"], raw["g2"], raw["be2"])
    h = block(h, raw["w3"], raw["b3"], raw["g3"], raw["be3"])
    out = jnp.dot(h.astype(jnp.bfloat16), raw["w4"].astype(jnp.bfloat16),
                  preferred_element_type=jnp.float32) + raw["b4"]
    return out[0] if out.shape[0] == 1 else out


if __name__ == "__main__":
    # Small shapes consistent with the module: 16x16 board, 2 channels
    # => input_size = 512; hidden_size = 32; batch = 2.
    INPUT_SIZE = 16 * 16 * 2
    HIDDEN_SIZE = 32
    BATCH = 2

    key = jax.random.PRNGKey(0)
    pkey, vkey, xkey = jax.random.split(key, 3)

    raw = init_params(pkey, INPUT_SIZE, HIDDEN_SIZE)
    # Perturb the (unpadded) bias/LN vectors so those code paths are numerically
    # exercised (the module itself initializes them to 0 / 1); padding invariants
    # are re-established by prepare_params.
    for name in ("b1", "b2", "b3", "b4", "g1", "g2", "g3", "be1", "be2", "be3"):
        vkey, sub = jax.random.split(vkey)
        raw[name] = raw[name] + 0.05 * jax.random.normal(sub, raw[name].shape,
                                                         dtype=jnp.float32)

    params, true_dims = prepare_params(raw)
    x = jax.random.normal(xkey, (BATCH, INPUT_SIZE), dtype=jnp.float32)

    out = jax.block_until_ready(minesweeper_forward(x, params, true_dims=true_dims))
    ref = _reference_forward(x, raw)

    assert out.shape == (BATCH, INPUT_SIZE // 2), out.shape
    assert jnp.allclose(out, ref, atol=2e-2, rtol=2e-2), "mismatch vs reference"

    print("KERNEL_OK")
</pallas_src>

<mosaic_0001>
module attributes {stable_mosaic.version = 11 : i64} {
  func.func @minesweeper_mlp_kernel(%arg0: i32, %arg1: memref<8x512xf32, #tpu.memory_space<vmem>>, %arg2: memref<512x128xbf16, #tpu.memory_space<vmem>>, %arg3: memref<128x128xbf16, #tpu.memory_space<vmem>>, %arg4: memref<128x256xbf16, #tpu.memory_space<vmem>>, %arg5: memref<256x256xbf16, #tpu.memory_space<vmem>>, %arg6: memref<10x256xf32, #tpu.memory_space<vmem>>, %arg7: memref<8x256xf32, #tpu.memory_space<vmem>>) attributes {dimension_semantics = [#tpu.dimension_semantics<parallel>], iteration_bounds = array<i64: 1>, scalar_prefetch = 0 : i64, scratch_operands = 0 : i64, tpu.core_type = #tpu.core_type<tc>, window_params = [{transform_indices = @transform_0, window_bounds = array<i64: 8, 512>}, {pipeline_mode = #tpu.pipeline_mode<synchronous>, transform_indices = @transform_1, window_bounds = array<i64: 512, 128>}, {pipeline_mode = #tpu.pipeline_mode<synchronous>, transform_indices = @transform_2, window_bounds = array<i64: 128, 128>}, {pipeline_mode = #tpu.pipeline_mode<synchronous>, transform_indices = @transform_3, window_bounds = array<i64: 128, 256>}, {pipeline_mode = #tpu.pipeline_mode<synchronous>, transform_indices = @transform_4, window_bounds = array<i64: 256, 256>}, {pipeline_mode = #tpu.pipeline_mode<synchronous>, transform_indices = @transform_5, window_bounds = array<i64: 10, 256>}, {transform_indices = @transform_6, window_bounds = array<i64: 8, 256>}]} {
    %c0 = arith.constant 0 : index
    %c0_0 = arith.constant 0 : index
    %0 = vector.load %arg6[%c0, %c0_0] : memref<10x256xf32, #tpu.memory_space<vmem>>, vector<10x256xf32>
    %1 = vector.extract_strided_slice %0 {offsets = [0, 0], sizes = [1, 128], strides = [1, 1]} : vector<10x256xf32> to vector<1x128xf32>
    %2 = vector.extract_strided_slice %0 {offsets = [1, 0], sizes = [1, 128], strides = [1, 1]} : vector<10x256xf32> to vector<1x128xf32>
    %3 = vector.extract_strided_slice %0 {offsets = [2, 0], sizes = [1, 128], strides = [1, 1]} : vector<10x256xf32> to vector<1x128xf32>
    %4 = vector.extract_strided_slice %0 {offsets = [3, 0], sizes = [1, 128], strides = [1, 1]} : vector<10x256xf32> to vector<1x128xf32>
    %5 = vector.extract_strided_slice %0 {offsets = [4, 0], sizes = [1, 128], strides = [1, 1]} : vector<10x256xf32> to vector<1x128xf32>
    %6 = vector.extract_strided_slice %0 {offsets = [5, 0], sizes = [1, 128], strides = [1, 1]} : vector<10x256xf32> to vector<1x128xf32>
    %7 = vector.extract_strided_slice %0 {offsets = [6, 0], sizes = [1, 256], strides = [1, 1]} : vector<10x256xf32> to vector<1x256xf32>
    %8 = vector.extract_strided_slice %0 {offsets = [7, 0], sizes = [1, 256], strides = [1, 1]} : vector<10x256xf32> to vector<1x256xf32>
    %9 = vector.extract_strided_slice %0 {offsets = [8, 0], sizes = [1, 256], strides = [1, 1]} : vector<10x256xf32> to vector<1x256xf32>
    %10 = vector.extract_strided_slice %0 {offsets = [9, 0], sizes = [1, 256], strides = [1, 1]} : vector<10x256xf32> to vector<1x256xf32>
    %c0_1 = arith.constant 0 : index
    %c0_2 = arith.constant 0 : index
    %11 = vector.load %arg1[%c0_1, %c0_2] : memref<8x512xf32, #tpu.memory_space<vmem>>, vector<8x512xf32>
    %12 = arith.truncf %11 : vector<8x512xf32> to vector<8x512xbf16>
    %c0_3 = arith.constant 0 : index
    %c0_4 = arith.constant 0 : index
    %13 = vector.load %arg2[%c0_3, %c0_4] : memref<512x128xbf16, #tpu.memory_space<vmem>>, vector<512x128xbf16>
    %cst = arith.constant dense<0.000000e+00> : vector<8x128xf32>
    %14 = tpu.matmul %12, %13, %cst {dimension_numbers = #tpu.dot_dimension_numbers<[1], [0], [0], [1], [0, 0, 1, 1], [], []>} : vector<8x512xbf16>, vector<512x128xbf16>, vector<8x128xf32> -> vector<8x128xf32>
    %15 = vector.broadcast %1 : vector<1x128xf32> to vector<8x128xf32>
    %16 = arith.addf %14, %15 : vector<8x128xf32>
    %cst_5 = arith.constant dense<0.000000e+00> : vector<8xf32>
    %17 = vector.multi_reduction <add>, %16, %cst_5 [1] : vector<8x128xf32> to vector<8xf32>
    %18 = vector.shape_cast %17 : vector<8xf32> to vector<8x1xf32>
    %19 = arith.mulf %16, %16 : vector<8x128xf32>
    %cst_6 = arith.constant dense<0.000000e+00> : vector<8xf32>
    %20 = vector.multi_reduction <add>, %19, %cst_6 [1] : vector<8x128xf32> to vector<8xf32>
    %21 = vector.shape_cast %20 : vector<8xf32> to vector<8x1xf32>
    %cst_7 = arith.constant 3.125000e-02 : f32
    %22 = vector.broadcast %cst_7 : f32 to vector<8x1xf32>
    %23 = arith.mulf %18, %22 : vector<8x1xf32>
    %cst_8 = arith.constant 3.125000e-02 : f32
    %24 = vector.broadcast %cst_8 : f32 to vector<8x1xf32>
    %25 = arith.mulf %21, %24 : vector<8x1xf32>
    %26 = arith.mulf %23, %23 : vector<8x1xf32>
    %27 = arith.subf %25, %26 : vector<8x1xf32>
    %28 = vector.broadcast %23 : vector<8x1xf32> to vector<8x128xf32>
    %29 = arith.subf %16, %28 : vector<8x128xf32>
    %cst_9 = arith.constant 9.99999974E-6 : f32
    %30 = vector.broadcast %cst_9 : f32 to vector<8x1xf32>
    %31 = arith.addf %27, %30 : vector<8x1xf32>
    %32 = math.rsqrt %31 : vector<8x1xf32>
    %33 = vector.broadcast %32 : vector<8x1xf32> to vector<8x128xf32>
    %34 = arith.mulf %29, %33 : vector<8x128xf32>
    %35 = vector.broadcast %2 : vector<1x128xf32> to vector<8x128xf32>
    %36 = arith.mulf %34, %35 : vector<8x128xf32>
    %37 = vector.broadcast %3 : vector<1x128xf32> to vector<8x128xf32>
    %38 = arith.addf %36, %37 : vector<8x128xf32>
    %cst_10 = arith.constant 0.000000e+00 : f32
    %39 = vector.broadcast %cst_10 : f32 to vector<8x128xf32>
    %40 = arith.maximumf %38, %39 : vector<8x128xf32>
    %41 = arith.truncf %40 : vector<8x128xf32> to vector<8x128xbf16>
    %c0_11 = arith.constant 0 : index
    %c0_12 = arith.constant 0 : index
    %42 = vector.load %arg3[%c0_11, %c0_12] : memref<128x128xbf16, #tpu.memory_space<vmem>>, vector<128x128xbf16>
    %cst_13 = arith.constant dense<0.000000e+00> : vector<8x128xf32>
    %43 = tpu.matmul %41, %42, %cst_13 {dimension_numbers = #tpu.dot_dimension_numbers<[1], [0], [0], [1], [0, 0, 1, 1], [], []>} : vector<8x128xbf16>, vector<128x128xbf16>, vector<8x128xf32> -> vector<8x128xf32>
    %44 = vector.broadcast %4 : vector<1x128xf32> to vector<8x128xf32>
    %45 = arith.addf %43, %44 : vector<8x128xf32>
    %cst_14 = arith.constant dense<0.000000e+00> : vector<8xf32>
    %46 = vector.multi_reduction <add>, %45, %cst_14 [1] : vector<8x128xf32> to vector<8xf32>
    %47 = vector.shape_cast %46 : vector<8xf32> to vector<8x1xf32>
    %48 = arith.mulf %45, %45 : vector<8x128xf32>
    %cst_15 = arith.constant dense<0.000000e+00> : vector<8xf32>
    %49 = vector.multi_reduction <add>, %48, %cst_15 [1] : vector<8x128xf32> to vector<8xf32>
    %50 = vector.shape_cast %49 : vector<8xf32> to vector<8x1xf32>
    %cst_16 = arith.constant 1.562500e-02 : f32
    %51 = vector.broadcast %cst_16 : f32 to vector<8x1xf32>
    %52 = arith.mulf %47, %51 : vector<8x1xf32>
    %cst_17 = arith.constant 1.562500e-02 : f32
    %53 = vector.broadcast %cst_17 : f32 to vector<8x1xf32>
    %54 = arith.mulf %50, %53 : vector<8x1xf32>
    %55 = arith.mulf %52, %52 : vector<8x1xf32>
    %56 = arith.subf %54, %55 : vector<8x1xf32>
    %57 = vector.broadcast %52 : vector<8x1xf32> to vector<8x128xf32>
    %58 = arith.subf %45, %57 : vector<8x128xf32>
    %cst_18 = arith.constant 9.99999974E-6 : f32
    %59 = vector.broadcast %cst_18 : f32 to vector<8x1xf32>
    %60 = arith.addf %56, %59 : vector<8x1xf32>
    %61 = math.rsqrt %60 : vector<8x1xf32>
    %62 = vector.broadcast %61 : vector<8x1xf32> to vector<8x128xf32>
    %63 = arith.mulf %58, %62 : vector<8x128xf32>
    %64 = vector.broadcast %5 : vector<1x128xf32> to vector<8x128xf32>
    %65 = arith.mulf %63, %64 : vector<8x128xf32>
    %66 = vector.broadcast %6 : vector<1x128xf32> to vector<8x128xf32>
    %67 = arith.addf %65, %66 : vector<8x128xf32>
    %cst_19 = arith.constant 0.000000e+00 : f32
    %68 = vector.broadcast %cst_19 : f32 to vector<8x128xf32>
    %69 = arith.maximumf %67, %68 : vector<8x128xf32>
    %70 = arith.truncf %69 : vector<8x128xf32> to vector<8x128xbf16>
    %c0_20 = arith.constant 0 : index
    %c0_21 = arith.constant 0 : index
    %71 = vector.load %arg4[%c0_20, %c0_21] : memref<128x256xbf16, #tpu.memory_space<vmem>>, vector<128x256xbf16>
    %cst_22 = arith.constant dense<0.000000e+00> : vector<8x256xf32>
    %72 = tpu.matmul %70, %71, %cst_22 {dimension_numbers = #tpu.dot_dimension_numbers<[1], [0], [0], [1], [0, 0, 1, 1], [], []>} : vector<8x128xbf16>, vector<128x256xbf16>, vector<8x256xf32> -> vector<8x256xf32>
    %73 = vector.broadcast %7 : vector<1x256xf32> to vector<8x256xf32>
    %74 = arith.addf %72, %73 : vector<8x256xf32>
    %cst_23 = arith.constant dense<0.000000e+00> : vector<8xf32>
    %75 = vector.multi_reduction <add>, %74, %cst_23 [1] : vector<8x256xf32> to vector<8xf32>
    %76 = vector.shape_cast %75 : vector<8xf32> to vector<8x1xf32>
    %77 = arith.mulf %74, %74 : vector<8x256xf32>
    %cst_24 = arith.constant dense<0.000000e+00> : vector<8xf32>
    %78 = vector.multi_reduction <add>, %77, %cst_24 [1] : vector<8x256xf32> to vector<8xf32>
    %79 = vector.shape_cast %78 : vector<8xf32> to vector<8x1xf32>
    %cst_25 = arith.constant 3.906250e-03 : f32
    %80 = vector.broadcast %cst_25 : f32 to vector<8x1xf32>
    %81 = arith.mulf %76, %80 : vector<8x1xf32>
    %cst_26 = arith.constant 3.906250e-03 : f32
    %82 = vector.broadcast %cst_26 : f32 to vector<8x1xf32>
    %83 = arith.mulf %79, %82 : vector<8x1xf32>
    %84 = arith.mulf %81, %81 : vector<8x1xf32>
    %85 = arith.subf %83, %84 : vector<8x1xf32>
    %86 = vector.broadcast %81 : vector<8x1xf32> to vector<8x256xf32>
    %87 = arith.subf %74, %86 : vector<8x256xf32>
    %cst_27 = arith.constant 9.99999974E-6 : f32
    %88 = vector.broadcast %cst_27 : f32 to vector<8x1xf32>
    %89 = arith.addf %85, %88 : vector<8x1xf32>
    %90 = math.rsqrt %89 : vector<8x1xf32>
    %91 = vector.broadcast %90 : vector<8x1xf32> to vector<8x256xf32>
    %92 = arith.mulf %87, %91 : vector<8x256xf32>
    %93 = vector.broadcast %8 : vector<1x256xf32> to vector<8x256xf32>
    %94 = arith.mulf %92, %93 : vector<8x256xf32>
    %95 = vector.broadcast %9 : vector<1x256xf32> to vector<8x256xf32>
    %96 = arith.addf %94, %95 : vector<8x256xf32>
    %cst_28 = arith.constant 0.000000e+00 : f32
    %97 = vector.broadcast %cst_28 : f32 to vector<8x256xf32>
    %98 = arith.maximumf %96, %97 : vector<8x256xf32>
    %99 = arith.truncf %98 : vector<8x256xf32> to vector<8x256xbf16>
    %c0_29 = arith.constant 0 : index
    %c0_30 = arith.constant 0 : index
    %100 = vector.load %arg5[%c0_29, %c0_30] : memref<256x256xbf16, #tpu.memory_space<vmem>>, vector<256x256xbf16>
    %cst_31 = arith.constant dense<0.000000e+00> : vector<8x256xf32>
    %101 = tpu.matmul %99, %100, %cst_31 {dimension_numbers = #tpu.dot_dimension_numbers<[1], [0], [0], [1], [0, 0, 1, 1], [], []>} : vector<8x256xbf16>, vector<256x256xbf16>, vector<8x256xf32> -> vector<8x256xf32>
    %102 = vector.broadcast %10 : vector<1x256xf32> to vector<8x256xf32>
    %103 = arith.addf %101, %102 : vector<8x256xf32>
    %c0_32 = arith.constant 0 : index
    %c0_33 = arith.constant 0 : index
    %104 = vector.load %arg7[%c0_32, %c0_33] : memref<8x256xf32, #tpu.memory_space<vmem>>, vector<8x256xf32>
    tpu.vector_store %arg7[%c0_32, %c0_33], %103 {strides = array<i32>} : memref<8x256xf32, #tpu.memory_space<vmem>>, vector<8x256xf32>,
    return
  }
  func.func @transform_0(%arg0: i32) -> (i32, i32) {
    %c0_i32 = arith.constant 0 : i32
    %c0_i32_0 = arith.constant 0 : i32
    return %arg0, %c0_i32 : i32, i32
  }
  func.func @transform_1(%arg0: i32) -> (i32, i32) {
    %c0_i32 = arith.constant 0 : i32
    %c0_i32_0 = arith.constant 0 : i32
    %c0_i32_1 = arith.constant 0 : i32
    return %c0_i32, %c0_i32_0 : i32, i32
  }
  func.func @transform_2(%arg0: i32) -> (i32, i32) {
    %c0_i32 = arith.constant 0 : i32
    %c0_i32_0 = arith.constant 0 : i32
    %c0_i32_1 = arith.constant 0 : i32
    return %c0_i32, %c0_i32_0 : i32, i32
  }
  func.func @transform_3(%arg0: i32) -> (i32, i32) {
    %c0_i32 = arith.constant 0 : i32
    %c0_i32_0 = arith.constant 0 : i32
    %c0_i32_1 = arith.constant 0 : i32
    return %c0_i32, %c0_i32_0 : i32, i32
  }
  func.func @transform_4(%arg0: i32) -> (i32, i32) {
    %c0_i32 = arith.constant 0 : i32
    %c0_i32_0 = arith.constant 0 : i32
    %c0_i32_1 = arith.constant 0 : i32
    return %c0_i32, %c0_i32_0 : i32, i32
  }
  func.func @transform_5(%arg0: i32) -> (i32, i32) {
    %c0_i32 = arith.constant 0 : i32
    %c0_i32_0 = arith.constant 0 : i32
    %c0_i32_1 = arith.constant 0 : i32
    return %c0_i32, %c0_i32_0 : i32, i32
  }
  func.func @transform_6(%arg0: i32) -> (i32, i32) {
    %c0_i32 = arith.constant 0 : i32
    %c0_i32_0 = arith.constant 0 : i32
    return %arg0, %c0_i32 : i32, i32
  }
}

</mosaic_0001>

<bundles_post_ra>
// kernel: minesweeper_forward.1
= control target key start
LH: loop header
LB: loop body
LE: loop exit
PB: predicated region body
PF: predicated region fallthrough
CT: control target
= control target key end

     0   :  { %11 = vsyncpa [#allocation3], 0  ;;  %s1632_s0 = inlined_call_operand.vmem [shape: f32[8,512], index: 0, kind: input, shape index: {}]   ;;  %s1633_s1 = inlined_call_operand.hbm [shape: bf16[512,128], index: 1, kind: input, shape index: {}]   ;;  %s1634_s2 = inlined_call_operand.hbm [shape: bf16[128,128], index: 2, kind: input, shape index: {}]   ;;  %s1635_s3 = inlined_call_operand.hbm [shape: bf16[128,256], index: 3, kind: input, shape index: {}]   ;;  %s1636_s4 = inlined_call_operand.hbm [shape: bf16[256,256], index: 4, kind: input, shape index: {}]   ;;  %s1637_s5 = inlined_call_operand.vmem [shape: f32[10,256], index: 5, kind: input, shape index: {}]   ;;  %s1638_s6 = inlined_call_operand.vmem [shape: f32[8,256], index: 6, kind: output, shape index: {}]  }
   0x1   :  { %12 = vsyncpa [#allocation5], 0 }
   0x2   :  { %13 = vsyncpa [#allocation8], 0  ;;  %s33_s23 = sshll.u32 %s1634_s2, 4  ;;  %s1515_s24 = smov [#allocation4]   ;;  %s34_s23 = int_to_ptr.hbm [resolvable:$true] %s33_s23 }
   0x3   :  { %s35_s25 = sshll.u32 %s1515_s24, 4  ;;  %s20_s28 = sshll.u32 %s1633_s1, 4  ;;  %s36_s25 = int_to_ptr.vmem [resolvable:$true] %s35_s25  ;;  %s21_s28 = int_to_ptr.hbm [resolvable:$true] %s20_s28 }
   0x4   :  { %s1516_s29 = smov 64   ;;  %s1517_s30 = smov 4  }
   0x5   :  { %41 = dma.hbm_to_vmem [thread:$0]  %s34_s23, 1024, %s36_s25, [#allocation5], %s1516_s29, %s1516_s29, %s1517_s30  }
   0x6   :  { %s1518_s7 = smov [#allocation2]   ;;  %s46_s11 = sshll.u32 %s1635_s3, 4  ;;  %s47_s11 = int_to_ptr.hbm [resolvable:$true] %s46_s11 }
   0x7   :  { %s22_s8 = sshll.u32 %s1518_s7, 4  ;;  %s1519_s2 = smov [#allocation6]   ;;  %s23_s8 = int_to_ptr.vmem [resolvable:$true] %s22_s8 }
   0x8   :  { %28 = dma.hbm_to_vmem [thread:$0]  %s21_s28, 4096, %s23_s8, [#allocation3], %s1516_s29, %s1516_s29, %s1517_s30  }
   0x9   :  { %s48_s12 = sshll.u32 %s1519_s2, 4  ;;  %s59_s1 = sshll.u32 %s1636_s4, 4  ;;  %s49_s12 = int_to_ptr.vmem [resolvable:$true] %s48_s12  ;;  %s60_s1 = int_to_ptr.hbm [resolvable:$true] %s59_s1 }
   0xa   :  { %s1520_s15 = smov 128   ;;  %s1521_s16 = smov 8  }
   0xb   :  { %54 = dma.hbm_to_vmem [thread:$0]  %s47_s11, 2048, %s49_s12, [#allocation5], %s1520_s15, %s1520_s15, %s1521_s16  }
   0xc   :  { %s1522_s17 = smov [#allocation7]  }
   0xd   :  { %s61_s18 = sshll.u32 %s1522_s17, 4  ;;  %s62_s18 = int_to_ptr.vmem [resolvable:$true] %s61_s18 }
   0xe   :  { %67 = dma.hbm_to_vmem [thread:$0]  %s60_s1, 4096, %s62_s18, [#allocation8], %s1520_s15, %s1520_s15, %s1521_s16  }
   0xf   :  { %1509 = dma.done.wait [#allocation3], 4096  }
  0x10   :  { %1510 = vsyncadd [#allocation3], 4294963200 }
  0x11   :  { %1511 = dma.done.wait [#allocation5], 3072  }
  0x12   :  { %1512 = vsyncadd [#allocation5], 4294964224 }
  0x13   :  { %1513 = dma.done.wait [#allocation8], 4096  }
  0x14   :  { %1514 = vsyncadd [#allocation8], 4294963200  ;;  %v1318_v0 = vld [vmem:[#allocation2 + $0x38] sm:$0xff]  ;;  %v1317_v4 = vld [vmem:[#allocation2 + $0x30] sm:$0xff] }
  0x15   :  { %v1326_v1 = vld [vmem:[#allocation2 + $0x78] sm:$0xff]  ;;  %355 = vmatpush.bf16.msra.mxu0 %v1318_v0  ;;  %v1325_v5 = vld [vmem:[#allocation2 + $0x70] sm:$0xff]  ;;  %v1316_v8 = vld [vmem:[#allocation2 + $0x28] sm:$0xff] }
  0x16   :  { %v1334_v2 = vld [vmem:[#allocation2 + $0xb8] sm:$0xff]  ;;  %368 = vmatpush.bf16.msra.mxu1 %v1326_v1  ;;  %v1333_v6 = vld [vmem:[#allocation2 + $0xb0] sm:$0xff]  ;;  %v1324_v9 = vld [vmem:[#allocation2 + $0x68] sm:$0xff] }
  0x17   :  { %v1342_v3 = vld [vmem:[#allocation2 + $0xf8] sm:$0xff]  ;;  %381 = vmatpush.bf16.msra.mxu2 %v1334_v2  ;;  %v1341_v7 = vld [vmem:[#allocation2 + $0xf0] sm:$0xff]  ;;  %v1332_v10 = vld [vmem:[#allocation2 + $0xa8] sm:$0xff] }
  0x18   :  { %394 = vmatpush.bf16.msra.mxu3 %v1342_v3  ;;  %v1340_v11 = vld [vmem:[#allocation2 + $0xe8] sm:$0xff]  ;;  %v1315_v12 = vld [vmem:[#allocation2 + $0x20] sm:$0xff]  ;;  %v1314_v16 = vld [vmem:[#allocation2 + $0x18] sm:$0xff] }
  0x19   :  { %356 = vmatpush.bf16.msra.mxu0 %v1317_v4  ;;  %v1323_v13 = vld [vmem:[#allocation2 + $0x60] sm:$0xff]  ;;  %v1322_v17 = vld [vmem:[#allocation2 + $0x58] sm:$0xff]  ;;  %v1313_v20 = vld [vmem:[#allocation2 + $0x10] sm:$0xff] }
  0x1a   :  { %369 = vmatpush.bf16.msra.mxu1 %v1325_v5  ;;  %v1331_v14 = vld [vmem:[#allocation2 + $0xa0] sm:$0xff]  ;;  %v1330_v18 = vld [vmem:[#allocation2 + $0x98] sm:$0xff]  ;;  %v1321_v21 = vld [vmem:[#allocation2 + $0x50] sm:$0xff] }
  0x1b   :  { %382 = vmatpush.bf16.msra.mxu2 %v1333_v6  ;;  %v1339_v15 = vld [vmem:[#allocation2 + $0xe0] sm:$0xff]  ;;  %v1338_v19 = vld [vmem:[#allocation2 + $0xd8] sm:$0xff]  ;;  %v1329_v22 = vld [vmem:[#allocation2 + $0x90] sm:$0xff] }
  0x1c   :  { %395 = vmatpush.bf16.msra.mxu3 %v1341_v7  ;;  %v1337_v23 = vld [vmem:[#allocation2 + $0xd0] sm:$0xff]  ;;  %v1312_v24 = vld [vmem:[#allocation2 + $0x8] sm:$0xff]  ;;  %v1311_v28 = vld [vmem:[#allocation2] sm:$0xff] }
  0x1d   :  { %357 = vmatpush.bf16.msra.mxu0 %v1316_v8  ;;  %v1320_v25 = vld [vmem:[#allocation2 + $0x48] sm:$0xff]  ;;  %v1319_v29 = vld [vmem:[#allocation2 + $0x40] sm:$0xff]  ;;  %v92_v34 = vld [vmem:[%s1632_s0 + $0x10] sm:$0xff] }
  0x1e   :  { %370 = vmatpush.bf16.msra.mxu1 %v1324_v9  ;;  %v1328_v26 = vld [vmem:[#allocation2 + $0x88] sm:$0xff]  ;;  %v1327_v30 = vld [vmem:[#allocation2 + $0x80] sm:$0xff]  ;;  %v93_v35 = vld [vmem:[%s1632_s0 + $0x18] sm:$0xff]  ;;  %v96_v38 = vpack.c.bf16 %v92_v34, %v92_v34 }
  0x1f   :  { %383 = vmatpush.bf16.msra.mxu2 %v1332_v10  ;;  %v1336_v27 = vld [vmem:[#allocation2 + $0xc8] sm:$0xff]  ;;  %v90_v31 = vld [vmem:[%s1632_s0] sm:$0xff]  ;;  %v97_v39 = vpack.c.bf16 %v93_v35, %v93_v35  ;;  %v1350_v55 = vld [vmem:[#allocation4 + $0x38] sm:$0xff] }
  0x20   :  { %396 = vmatpush.bf16.msra.mxu3 %v1340_v11  ;;  %v91_v32 = vld [vmem:[%s1632_s0 + $0x8] sm:$0xff]  ;;  %v1335_v33 = vld [vmem:[#allocation2 + $0xc0] sm:$0xff]  ;;  %v94_v36 = vpack.c.bf16 %v90_v31, %v90_v31  ;;  %v1349_v56 = vld [vmem:[#allocation4 + $0x30] sm:$0xff] }
  0x21   :  { %358 = vmatpush.bf16.msra.mxu0 %v1315_v12  ;;  %v95_v37 = vpack.c.bf16 %v91_v32, %v91_v32  ;;  %v1585_v40 = vld [vmem:[%s1637_s5] sm:$0xff]  ;;  %v1348_v57 = vld [vmem:[#allocation4 + $0x28] sm:$0xff]  ;;  %v1346_v59 = vld [vmem:[#allocation4 + $0x18] sm:$0xff] }
  0x22   :  { %371 = vmatpush.bf16.msra.mxu1 %v1323_v13  ;;  %v162_v41 = vperm.slane %v1585_v40, 0  ;;  %v1347_v58 = vld [vmem:[#allocation4 + $0x20] sm:$0xff]  ;;  %v1345_v60 = vld [vmem:[#allocation4 + $0x10] sm:$0xff]  ;;  %v1344_v62 = vld [vmem:[#allocation4 + $0x8] sm:$0xff]  ;;  %v429_v13 = vperm.slane %v1585_v40, 1 }
  0x23   :  { %384 = vmatpush.bf16.msra.mxu2 %v1331_v14  ;;  %v1343_v63 = vld [vmem:[#allocation4] sm:$0xff] }
  0x24   :  { %397 = vmatpush.bf16.msra.mxu3 %v1339_v15  ;;  %v1169_v32 = vld [vmem:[#allocation6 + $0x60] sm:$0xf]  ;;  %v1363_v34 = vld [vmem:[#allocation6 + $0x64] sm:$0xf] }
  0x25   :  { %359 = vmatpush.bf16.msra.mxu0 %v1314_v16  ;;  %v431_v16 = vperm.slane %v1585_v40, 2 }
  0x26   :  { %372 = vmatpush.bf16.msra.mxu1 %v1322_v17 }
  0x27   :  { %385 = vmatpush.bf16.msra.mxu2 %v1330_v18 }
  0x28   :  { %398 = vmatpush.bf16.msra.mxu3 %v1338_v19 }
  0x29   :  { %360 = vmatpush.bf16.msra.mxu0 %v1313_v20 }
  0x2a   :  { %373 = vmatpush.bf16.msra.mxu1 %v1321_v21  ;;  %v451_v21 = vperm.slane %v1585_v40, 3 }
  0x2b   :  { %386 = vmatpush.bf16.msra.mxu2 %v1329_v22 }
  0x2c   :  { %399 = vmatpush.bf16.msra.mxu3 %v1337_v23 }
  0x2d   :  { %361 = vmatpush.bf16.msra.mxu0 %v1312_v24 }
  0x2e   :  { %374 = vmatpush.bf16.msra.mxu1 %v1320_v25 }
  0x2f   :  { %387 = vmatpush.bf16.msra.mxu2 %v1328_v26  ;;  %v1177_v26 = vld [vmem:[#allocation6 + $0x70] sm:$0xf] }
  0x30   :  { %400 = vmatpush.bf16.msra.mxu3 %v1336_v27  ;;  %v1366_v27 = vld [vmem:[#allocation6 + $0x74] sm:$0xf0] }
  0x31   :  { %362 = vmatpush.bf16.msra.mxu0 %v1311_v28  ;;  %v1365_v28 = vld [vmem:[#allocation6 + $0x74] sm:$0xf] }
  0x32   :  { %375 = vmatpush.bf16.msra.mxu1 %v1319_v29  ;;  %v1178_v29 = vor.u32 %v1366_v27, %v1177_v26  ;;  %v535_v26 = vperm.slane %v1585_v40, 4 }
  0x33   :  { %388 = vmatpush.bf16.msra.mxu2 %v1327_v30  ;;  %v1179_v30 = vld [vmem:[#allocation6 + $0x78] sm:$0xf0] }
  0x34   :  { %401 = vmatpush.bf16.msra.mxu3 %v1335_v33  ;;  %363 = vmatmul.bf16.vlgmr.msra.gmra.mxu0 %v94_v36  ;;  %v1182_v31 = vor.u32 %v1365_v28, %v1179_v30  ;;  %v1364_v33 = vld [vmem:[#allocation6 + $0x64] sm:$0xf0]  ;;  %v1171_v36 = vld [vmem:[#allocation6 + $0x68] sm:$0xf0] }
  0x35   :  { %376 = vmatmul.bf16.vlgmr.msra.gmra.mxu1 %v95_v37  ;;  %500 = vmatpush.bf16.msrb.mxu0 %v1350_v55  ;;  %v1170_v35 = vor.u32 %v1364_v33, %v1169_v32  ;;  %v1174_v37 = vor.u32 %v1363_v34, %v1171_v36  ;;  %v1147_v55 = vld [vmem:[#allocation6 + $0x38] sm:$0xf0] }
  0x36   :  { %389 = vmatmul.bf16.vlgmr.msra.gmra.mxu2 %v96_v38  ;;  %639 = vmatpush.bf16.msrb.mxu1 %v1178_v29  ;;  %v1161_v38 = vld [vmem:[#allocation6 + $0x50] sm:$0xf]  ;;  %v537_v29 = vperm.slane %v1585_v40, 5 }
  0x37   :  { %402 = vmatmul.bf16.vlgmr.msra.gmra.mxu3 %v97_v39  ;;  %652 = vmatpush.bf16.msrb.mxu2 %v1182_v31  ;;  %v1362_v39 = vld [vmem:[#allocation6 + $0x54] sm:$0xf0] }
  0x39   :  { %501 = vmatpush.bf16.msrb.mxu0 %v1349_v56 }
  0x3a   :  { %640 = vmatpush.bf16.msrb.mxu1 %v1170_v35  ;;  %v1602_v35 = vld [vmem:[%s1637_s5 + $0x8] sm:$0xff] }
  0x3b   :  { %653 = vmatpush.bf16.msrb.mxu2 %v1174_v37  ;;  %v558_v36 = vperm.slane %v1602_v35, 6 }
  0x3d   :  { %502 = vmatpush.bf16.msrb.mxu0 %v1348_v57  ;;  %v1137_v57 = vld [vmem:[#allocation6 + $0x20] sm:$0xf] }
  0x41   :  { %503 = vmatpush.bf16.msrb.mxu0 %v1347_v58  ;;  %v1356_v58 = vld [vmem:[#allocation6 + $0x24] sm:$0xf0] }
  0x45   :  { %504 = vmatpush.bf16.msrb.mxu0 %v1346_v59  ;;  %v1355_v59 = vld [vmem:[#allocation6 + $0x24] sm:$0xf] }
  0x49   :  { %505 = vmatpush.bf16.msrb.mxu0 %v1345_v60  ;;  %v1138_v60 = vor.u32 %v1356_v58, %v1137_v57  ;;  %v1307_v57 = vld [vmem:[#allocation7 + $0xf8] sm:$0xf0] }
  0x4d   :  { %506 = vmatpush.bf16.msrb.mxu0 %v1344_v62  ;;  %v1129_v62 = vld [vmem:[#allocation6 + $0x10] sm:$0xf] }
  0x51   :  { %507 = vmatpush.bf16.msrb.mxu0 %v1343_v63  ;;  %v1354_v63 = vld [vmem:[#allocation6 + $0x14] sm:$0xf0] }
  0xb1   :  { %v364_v42 = vpop.f32.mrf.mxu0 }
  0xb2   :  { %v377_v43 = vpop.f32.mrf.mxu1  ;;  %v365_v44 = vadd.f32 %v364_v42, %v162_v41  ;;  %v1361_v41 = vld [vmem:[#allocation6 + $0x54] sm:$0xf]  ;;  %v1162_v42 = vor.u32 %v1362_v39, %v1161_v38 }
  0xb4   :  { %v378_v45 = vadd.f32 %v377_v43, %v365_v44  ;;  %v1163_v43 = vld [vmem:[#allocation6 + $0x58] sm:$0xf0]  ;;  %641 = vmatpush.bf16.msrb.mxu1 %v1162_v42 }
  0xb5   :  { %v1166_v44 = vor.u32 %v1361_v41, %v1163_v43 }
  0xb7   :  { %654 = vmatpush.bf16.msrb.mxu2 %v1166_v44 }
  0xb9   :  { %v390_v46 = vpop.f32.mrf.mxu2  ;;  %v366_v49 = vpop.f32.mrf.mxu0 }
  0xba   :  { %v403_v47 = vpop.f32.mrf.mxu3  ;;  %v391_v48 = vadd.f32 %v390_v46, %v378_v45  ;;  %v379_v50 = vpop.f32.mrf.mxu1  ;;  %v1153_v45 = vld [vmem:[#allocation6 + $0x40] sm:$0xf]  ;;  %v1360_v46 = vld [vmem:[#allocation6 + $0x44] sm:$0xf0]  ;;  %v1155_v49 = vld [vmem:[#allocation6 + $0x48] sm:$0xf0] }
  0xbc   :  { %v404_v51 = vadd.f32 %v403_v47, %v391_v48  ;;  %v1359_v47 = vld [vmem:[#allocation6 + $0x44] sm:$0xf]  ;;  %v1154_v48 = vor.u32 %v1360_v46, %v1153_v45 }
  0xbd   :  { %v1158_v50 = vor.u32 %v1359_v47, %v1155_v49  ;;  %v1241_v47 = vld [vmem:[#allocation7 + $0x70] sm:$0xf] }
  0xbe   :  { %407 = vadd.xlane.f32.xlu0 %v404_v51  ;;  %v409_v54 = vmul.f32 %v404_v51, %v404_v51  ;;  %642 = vmatpush.bf16.msrb.mxu1 %v1154_v48  ;;  %v1382_v48 = vld [vmem:[#allocation7 + $0x74] sm:$0xf0]  ;;  %v1305_v49 = vld [vmem:[#allocation7 + $0xf0] sm:$0xf] }
  0xbf   :  { %655 = vmatpush.bf16.msrb.mxu2 %v1158_v50  ;;  %v1242_v50 = vor.u32 %v1382_v48, %v1241_v47  ;;  %v1201_v47 = vld [vmem:[#allocation7 + $0x20] sm:$0xf]  ;;  %v1372_v48 = vld [vmem:[#allocation7 + $0x24] sm:$0xf0] }
  0xc1   :  { %v392_v52 = vpop.f32.mrf.mxu2  ;;  %898 = vmatpush.bf16.msrb.mxu3 %v1242_v50  ;;  %v1202_v50 = vor.u32 %v1372_v48, %v1201_v47 }
  0xc2   :  { %v405_v53 = vpop.f32.mrf.mxu3  ;;  %v1358_v52 = vld [vmem:[#allocation6 + $0x34] sm:$0xf0] }
  0xc3   :  { %v1357_v53 = vld [vmem:[#allocation6 + $0x34] sm:$0xf] }
  0xc4   :  { %v1150_v56 = vor.u32 %v1357_v53, %v1147_v55  ;;  %v1243_v53 = vld [vmem:[#allocation7 + $0x78] sm:$0xf0] }
  0xc6   :  { %410 = vadd.xlane.f32.xlu0 %v409_v54  ;;  %656 = vmatpush.bf16.msrb.mxu2 %v1150_v56  ;;  %v1397_v56 = vld [vmem:[#allocation7 + $0xf4] sm:$0xf] }
  0xc7   :  { %v1310_v58 = vor.u32 %v1397_v56, %v1307_v57  ;;  %v1387_v56 = vld [vmem:[#allocation7 + $0xa4] sm:$0xf]  ;;  %v1267_v57 = vld [vmem:[#allocation7 + $0xa8] sm:$0xf0] }
 0x131   :  { %v408_v61 = vpop.xlane.xlu0 %407 }
 0x132   :  { %v412_v0 = vmul.f32 0.03125, %v408_v61  ;;  %v1139_v61 = vld [vmem:[#allocation6 + $0x28] sm:$0xf0] }
 0x134   :  { %v414_v2 = vmul.f32 %v412_v0, %v412_v0  ;;  %v416_v12 = vsub.f32 %v404_v51, %v412_v0  ;;  %v1145_v51 = vld [vmem:[#allocation6 + $0x30] sm:$0xf]  ;;  %v1142_v0 = vor.u32 %v1355_v59, %v1139_v61  ;;  %v1233_v59 = vld [vmem:[#allocation7 + $0x60] sm:$0xf] }
 0x135   :  { %v1146_v54 = vor.u32 %v1358_v52, %v1145_v51  ;;  %v1398_v51 = vld [vmem:[#allocation7 + $0xf4] sm:$0xf0]  ;;  %v1381_v52 = vld [vmem:[#allocation7 + $0x74] sm:$0xf]  ;;  %v1297_v61 = vld [vmem:[#allocation7 + $0xe0] sm:$0xf] }
 0x136   :  { %657 = vmatpush.bf16.msrb.mxu2 %v1142_v0  ;;  %v1246_v55 = vor.u32 %v1381_v52, %v1243_v53  ;;  %v1379_v0 = vld [vmem:[#allocation7 + $0x64] sm:$0xf]  ;;  %v1203_v53 = vld [vmem:[#allocation7 + $0x28] sm:$0xf0] }
 0x137   :  { %643 = vmatpush.bf16.msrb.mxu1 %v1146_v54  ;;  %v1306_v54 = vor.u32 %v1398_v51, %v1305_v49  ;;  %v1265_v49 = vld [vmem:[#allocation7 + $0xa0] sm:$0xf]  ;;  %v1388_v51 = vld [vmem:[#allocation7 + $0xa4] sm:$0xf0]  ;;  %v1371_v52 = vld [vmem:[#allocation7 + $0x24] sm:$0xf] }
 0x139   :  { %v411_v1 = vpop.xlane.xlu0 %410  ;;  %911 = vmatpush.bf16.msra.mxu0 %v1306_v54  ;;  %v1266_v54 = vor.u32 %v1388_v51, %v1265_v49 }
 0x13a   :  { %v413_v3 = vmul.f32 0.03125, %v411_v1  ;;  %v1353_v1 = vld [vmem:[#allocation6 + $0x14] sm:$0xf] }
 0x13b   :  { %644 = vmatpush.bf16.msrb.mxu1 %v1138_v60  ;;  %v1380_v60 = vld [vmem:[#allocation7 + $0x64] sm:$0xf0] }
 0x13c   :  { %v415_v4 = vsub.f32 %v413_v3, %v414_v2  ;;  %v1131_v2 = vld [vmem:[#allocation6 + $0x18] sm:$0xf0] }
 0x13e   :  { %v417_v5 = vadd.f32 1e-05, %v415_v4  ;;  %v1130_v4 = vor.u32 %v1354_v63, %v1129_v62  ;;  %v1234_v62 = vor.u32 %v1380_v60, %v1233_v59  ;;  %v1396_v63 = vld [vmem:[#allocation7 + $0xe4] sm:$0xf0]  ;;  %v1270_v60 = vor.u32 %v1387_v56, %v1267_v57 }
 0x140   :  { %1407 = vrsqrt.f32 %v417_v5  ;;  %vm424_vm1 = vweird.f32 %v417_v5  ;;  %645 = vmatpush.bf16.msrb.mxu1 %v1130_v4  ;;  %v1395_v4 = vld [vmem:[#allocation7 + $0xe4] sm:$0xf]  ;;  %899 = vmatpush.bf16.msrb.mxu3 %v1234_v62  ;;  %v1257_v62 = vld [vmem:[#allocation7 + $0x90] sm:$0xf] }
 0x146   :  { %v1408_v6 = vpop.eup %1407 }
 0x147   :  { %v419_v7 = vmul.f32 %v1408_v6, %v417_v5  ;;  %vm425_vm0 = vweird.f32 %v1408_v6  ;;  %v1134_v5 = vor.u32 %v1353_v1, %v1131_v2  ;;  %v1235_v1 = vld [vmem:[#allocation7 + $0x68] sm:$0xf0]  ;;  %v1298_v2 = vor.u32 %v1396_v63, %v1297_v61  ;;  %v1370_v61 = vld [vmem:[#allocation7 + $0x14] sm:$0xf0] }
 0x148   :  { %vm426_vm2 = vmor %vm424_vm1, %vm425_vm0  ;;  %v1386_v63 = vld [vmem:[#allocation7 + $0x94] sm:$0xf0] }
 0x149   :  { %v420_v8 = vmul.f32 %v1408_v6, %v419_v7  ;;  %v1352_v7 = vld [vmem:[#allocation6 + $0x4] sm:$0xf0]  ;;  %658 = vmatpush.bf16.msrb.mxu2 %v1134_v5  ;;  %v1299_v5 = vld [vmem:[#allocation7 + $0xe8] sm:$0xf0]  ;;  %912 = vmatpush.bf16.msra.mxu0 %v1298_v2  ;;  %v1369_v2 = vld [vmem:[#allocation7 + $0x14] sm:$0xf] }
 0x14b   :  { %v421_v9 = vmul.f32 0.5, %v420_v8  ;;  %v1351_v8 = vld [vmem:[#allocation6 + $0x4] sm:$0xf] }
 0x14d   :  { %v422_v10 = vsub.f32 1.5, %v421_v9  ;;  %v1123_v9 = vld [vmem:[#allocation6 + $0x8] sm:$0xf0] }
 0x14f   :  { %v423_v11 = vmul.f32 %v1408_v6, %v422_v10 }
 0x151   :  { %v427_v14 = vsel %vm426_vm2, %v1408_v6, %v423_v11  ;;  %v1121_v6 = vld [vmem:[#allocation6] sm:$0xf] }
 0x152   :  { %v428_v15 = vmul.f32 %v427_v14, %v416_v12  ;;  %v1122_v10 = vor.u32 %v1352_v7, %v1121_v6  ;;  %v1126_v12 = vor.u32 %v1351_v8, %v1123_v9  ;;  %v1302_v6 = vor.u32 %v1395_v4, %v1299_v5  ;;  %v1225_v7 = vld [vmem:[#allocation7 + $0x50] sm:$0xf]  ;;  %v1378_v8 = vld [vmem:[#allocation7 + $0x54] sm:$0xf0]  ;;  %v1385_v5 = vld [vmem:[#allocation7 + $0x94] sm:$0xf] }
 0x153   :  { %v1289_v9 = vld [vmem:[#allocation7 + $0xd0] sm:$0xf] }
 0x154   :  { %v430_v17 = vmul.f32 %v429_v13, %v428_v15  ;;  %646 = vmatpush.bf16.msrb.mxu1 %v1122_v10  ;;  %659 = vmatpush.bf16.msrb.mxu2 %v1126_v12  ;;  %v1226_v10 = vor.u32 %v1378_v8, %v1225_v7  ;;  %v1377_v12 = vld [vmem:[#allocation7 + $0x54] sm:$0xf]  ;;  %v1185_v7 = vld [vmem:[#allocation7] sm:$0xf] }
 0x156   :  { %v432_v18 = vadd.f32 %v431_v16, %v430_v17  ;;  %900 = vmatpush.bf16.msrb.mxu3 %v1226_v10  ;;  %v1249_v10 = vld [vmem:[#allocation7 + $0x80] sm:$0xf] }
 0x158   :  { %v433_v19 = vmax.f32 %v432_v18, 0.0  ;;  %924 = vmatpush.bf16.msra.mxu1 %v1246_v55  ;;  %937 = vmatpush.bf16.msra.mxu2 %v1310_v58  ;;  %v1206_v55 = vor.u32 %v1371_v52, %v1203_v53  ;;  %v1193_v58 = vld [vmem:[#allocation7 + $0x10] sm:$0xf] }
 0x15a   :  { %v434_v20 = vpack.c.bf16 %v433_v19, %v433_v19 }
 0x15c   :  { %508 = vmatmul.bf16.vlgmr.msrb.gmra.mxu0 %v434_v20  ;;  %938 = vmatpush.bf16.msra.mxu2 %v1302_v6  ;;  %v1259_v6 = vld [vmem:[#allocation7 + $0x98] sm:$0xf0] }
 0x15d   :  { %v1262_v8 = vor.u32 %v1385_v5, %v1259_v6 }
 0x1d9   :  { %v509_v22 = vpop.f32.mrf.mxu0 }
 0x1da   :  { %v1591_v23 = vadd.f32 %v509_v22, %v451_v21 }
 0x1dc   :  { %513 = vadd.xlane.f32.xlu1 %v1591_v23  ;;  %v515_v25 = vmul.f32 %v1591_v23, %v1591_v23 }
 0x1e1   :  { %v511_v24 = vpop.f32.mrf.mxu0 }
 0x1e4   :  { %516 = vadd.xlane.f32.xlu1 %v515_v25 }
 0x24f   :  { %v514_v3 = vpop.xlane.xlu1 %513 }
 0x250   :  { %v518_v11 = vmul.f32 0.015625, %v514_v3  ;;  %v1238_v3 = vor.u32 %v1379_v0, %v1235_v1  ;;  %v1194_v0 = vor.u32 %v1370_v61, %v1193_v58  ;;  %v1258_v1 = vor.u32 %v1386_v63, %v1257_v62 }
 0x252   :  { %v520_v14 = vmul.f32 %v518_v11, %v518_v11  ;;  %v522_v25 = vsub.f32 %v1591_v23, %v518_v11  ;;  %v557_v23 = vperm.slane %v1585_v40, 6  ;;  %925 = vmatpush.bf16.msra.mxu1 %v1238_v3  ;;  %v1394_v11 = vld [vmem:[#allocation7 + $0xd4] sm:$0xf0]  ;;  %v1195_v3 = vld [vmem:[#allocation7 + $0x18] sm:$0xf0] }
 0x253   :  { %v1198_v4 = vor.u32 %v1369_v2, %v1195_v3 }
 0x257   :  { %v517_v13 = vpop.xlane.xlu1 %516 }
 0x258   :  { %v519_v15 = vmul.f32 0.015625, %v517_v13  ;;  %v1227_v13 = vld [vmem:[#allocation7 + $0x58] sm:$0xf0] }
 0x25a   :  { %v521_v16 = vsub.f32 %v519_v15, %v520_v14  ;;  %v1290_v14 = vor.u32 %v1394_v11, %v1289_v9  ;;  %v1230_v15 = vor.u32 %v1377_v12, %v1227_v13  ;;  %v1368_v9 = vld [vmem:[#allocation7 + $0x4] sm:$0xf0]  ;;  %v1367_v13 = vld [vmem:[#allocation7 + $0x4] sm:$0xf] }
 0x25b   :  { %v1384_v11 = vld [vmem:[#allocation7 + $0x84] sm:$0xf0]  ;;  %v1186_v12 = vor.u32 %v1368_v9, %v1185_v7 }
 0x25c   :  { %v523_v17 = vadd.f32 1e-05, %v521_v16  ;;  %v1393_v16 = vld [vmem:[#allocation7 + $0xd4] sm:$0xf]  ;;  %913 = vmatpush.bf16.msra.mxu0 %v1290_v14  ;;  %926 = vmatpush.bf16.msra.mxu1 %v1230_v15  ;;  %v1187_v14 = vld [vmem:[#allocation7 + $0x8] sm:$0xf0] }
 0x25d   :  { %v1383_v15 = vld [vmem:[#allocation7 + $0x84] sm:$0xf] }
 0x25e   :  { %1409 = vrsqrt.f32 %v523_v17  ;;  %vm530_vm4 = vweird.f32 %v523_v17 }
 0x264   :  { %v1410_v18 = vpop.eup %1409 }
 0x265   :  { %v525_v19 = vmul.f32 %v1410_v18, %v523_v17  ;;  %vm531_vm3 = vweird.f32 %v1410_v18  ;;  %v1291_v17 = vld [vmem:[#allocation7 + $0xd8] sm:$0xf0] }
 0x266   :  { %vm532_vm5 = vmor %vm530_vm4, %vm531_vm3 }
 0x267   :  { %v526_v20 = vmul.f32 %v1410_v18, %v525_v19  ;;  %v1217_v19 = vld [vmem:[#allocation7 + $0x40] sm:$0xf] }
 0x269   :  { %v527_v21 = vmul.f32 0.5, %v526_v20  ;;  %v1376_v20 = vld [vmem:[#allocation7 + $0x44] sm:$0xf0] }
 0x26b   :  { %v528_v22 = vsub.f32 1.5, %v527_v21  ;;  %v1281_v21 = vld [vmem:[#allocation7 + $0xc0] sm:$0xf] }
 0x26d   :  { %v529_v24 = vmul.f32 %v1410_v18, %v528_v22  ;;  %v1218_v22 = vor.u32 %v1376_v20, %v1217_v19  ;;  %v1251_v19 = vld [vmem:[#allocation7 + $0x88] sm:$0xf0] }
 0x26e   :  { %v1254_v20 = vor.u32 %v1383_v15, %v1251_v19 }
 0x26f   :  { %v533_v27 = vsel %vm532_vm5, %v1410_v18, %v529_v24  ;;  %v1294_v18 = vor.u32 %v1393_v16, %v1291_v17  ;;  %v1392_v24 = vld [vmem:[#allocation7 + $0xc4] sm:$0xf0]  ;;  %901 = vmatpush.bf16.msrb.mxu3 %v1218_v22  ;;  %v1250_v17 = vor.u32 %v1384_v11, %v1249_v10 }
 0x270   :  { %v534_v28 = vmul.f32 %v533_v27, %v522_v25  ;;  %v1375_v25 = vld [vmem:[#allocation7 + $0x44] sm:$0xf]  ;;  %v1282_v27 = vor.u32 %v1392_v24, %v1281_v21 }
 0x271   :  { %939 = vmatpush.bf16.msra.mxu2 %v1294_v18  ;;  %v1190_v18 = vor.u32 %v1367_v13, %v1187_v14 }
 0x272   :  { %v536_v30 = vmul.f32 %v535_v26, %v534_v28  ;;  %v1219_v26 = vld [vmem:[#allocation7 + $0x48] sm:$0xf0]  ;;  %914 = vmatpush.bf16.msra.mxu0 %v1282_v27 }
 0x273   :  { %v1222_v28 = vor.u32 %v1375_v25, %v1219_v26 }
 0x274   :  { %v538_v31 = vadd.f32 %v537_v29, %v536_v30  ;;  %v1391_v29 = vld [vmem:[#allocation7 + $0xc4] sm:$0xf]  ;;  %v1283_v30 = vld [vmem:[#allocation7 + $0xc8] sm:$0xf0] }
 0x275   :  { %927 = vmatpush.bf16.msra.mxu1 %v1222_v28 }
 0x276   :  { %v539_v32 = vmax.f32 %v538_v31, 0.0  ;;  %v1286_v31 = vor.u32 %v1391_v29, %v1283_v30 }
 0x278   :  { %v540_v33 = vpack.c.bf16 %v539_v32, %v539_v32  ;;  %v1209_v32 = vld [vmem:[#allocation7 + $0x30] sm:$0xf]  ;;  %940 = vmatpush.bf16.msra.mxu2 %v1286_v31 }
 0x27a   :  { %647 = vmatmul.bf16.vlgmr.msrb.gmra.mxu1 %v540_v33  ;;  %660 = vmatmul.bf16.vlgmr.msrb.gmra.mxu2 %v540_v33  ;;  %v1374_v33 = vld [vmem:[#allocation7 + $0x34] sm:$0xf0] }
 0x2f7   :  { %v648_v34 = vpop.f32.mrf.mxu1 }
 0x2f8   :  { %v1606_v38 = vadd.f32 %v648_v34, %v557_v23  ;;  %v1273_v34 = vld [vmem:[#allocation7 + $0xb0] sm:$0xf]  ;;  %v1210_v23 = vor.u32 %v1374_v33, %v1209_v32 }
 0x2f9   :  { %v88_v33 = vld [vmem:[%s1637_s5 + $0x10] sm:$0x3] }
 0x2fa   :  { %v668_v45 = vmul.f32 %v1606_v38, %v1606_v38  ;;  %902 = vmatpush.bf16.msrb.mxu3 %v1210_v23  ;;  %v693_v23 = vperm.slane %v1602_v35, 7 }
 0x2fd   :  { %v661_v37 = vpop.f32.mrf.mxu2 }
 0x2fe   :  { %v1608_v39 = vadd.f32 %v661_v37, %v558_v36  ;;  %v1390_v36 = vld [vmem:[#allocation7 + $0xb4] sm:$0xf0]  ;;  %v1373_v37 = vld [vmem:[#allocation7 + $0x34] sm:$0xf]  ;;  %903 = vmatpush.bf16.msrb.mxu3 %v1202_v50 }
 0x2ff   :  { %v650_v41 = vpop.f32.mrf.mxu1 }
 0x300   :  { %v665_v42 = vadd.f32 %v1608_v39, %v1606_v38  ;;  %v669_v43 = vmul.f32 %v1608_v39, %v1608_v39  ;;  %v1211_v41 = vld [vmem:[#allocation7 + $0x38] sm:$0xf0] }
 0x302   :  { %666 = vadd.xlane.f32.xlu2 %v665_v42  ;;  %v670_v46 = vadd.f32 %v669_v43, %v668_v45  ;;  %v1274_v42 = vor.u32 %v1390_v36, %v1273_v34  ;;  %v1214_v43 = vor.u32 %v1373_v37, %v1211_v41  ;;  %v1275_v45 = vld [vmem:[#allocation7 + $0xb8] sm:$0xf0]  ;;  %904 = vmatpush.bf16.msrb.mxu3 %v1194_v0  ;;  %v89_v34 = vld [vmem:[%s1637_s5 + $0x18] sm:$0x3]  ;;  %v692_v41 = vperm.slane %v1585_v40, 7 }
 0x303   :  { %v737_v40 = vperm.slane %v89_v34, 1 }
 0x304   :  { %915 = vmatpush.bf16.msra.mxu0 %v1274_v42  ;;  %928 = vmatpush.bf16.msra.mxu1 %v1214_v43 }
 0x305   :  { %v663_v44 = vpop.f32.mrf.mxu2 }
 0x306   :  { %v1389_v44 = vld [vmem:[#allocation7 + $0xb4] sm:$0xf]  ;;  %905 = vmatpush.bf16.msrb.mxu3 %v1186_v12 }
 0x308   :  { %916 = vmatpush.bf16.msra.mxu0 %v1266_v54  ;;  %929 = vmatpush.bf16.msra.mxu1 %v1206_v55  ;;  %v736_v54 = vperm.slane %v88_v33, 1 }
 0x30a   :  { %671 = vadd.xlane.f32.xlu2 %v670_v46  ;;  %v1278_v46 = vor.u32 %v1389_v44, %v1275_v45  ;;  %v696_v45 = vperm.slane %v88_v33, 0 }
 0x30c   :  { %941 = vmatpush.bf16.msra.mxu2 %v1278_v46  ;;  %917 = vmatpush.bf16.msra.mxu0 %v1258_v1  ;;  %v697_v46 = vperm.slane %v89_v34, 0 }
 0x30d   :  { %930 = vmatpush.bf16.msra.mxu1 %v1198_v4 }
 0x310   :  { %942 = vmatpush.bf16.msra.mxu2 %v1270_v60  ;;  %918 = vmatpush.bf16.msra.mxu0 %v1250_v17 }
 0x311   :  { %931 = vmatpush.bf16.msra.mxu1 %v1190_v18 }
 0x314   :  { %943 = vmatpush.bf16.msra.mxu2 %v1262_v8 }
 0x318   :  { %944 = vmatpush.bf16.msra.mxu2 %v1254_v20 }
 0x375   :  { %v667_v59 = vpop.xlane.xlu2 %666 }
 0x376   :  { %v673_v16 = vmul.f32 0.00390625, %v667_v59 }
 0x378   :  { %v675_v22 = vmul.f32 %v673_v16, %v673_v16  ;;  %v677_v36 = vsub.f32 %v1606_v38, %v673_v16  ;;  %v678_v37 = vsub.f32 %v1608_v39, %v673_v16 }
 0x37d   :  { %v672_v21 = vpop.xlane.xlu2 %671 }
 0x37e   :  { %v674_v24 = vmul.f32 0.00390625, %v672_v21 }
 0x380   :  { %v676_v25 = vsub.f32 %v674_v24, %v675_v22 }
 0x382   :  { %v679_v26 = vadd.f32 1e-05, %v676_v25 }
 0x384   :  { %1411 = vrsqrt.f32 %v679_v26  ;;  %vm686_vm7 = vweird.f32 %v679_v26 }
 0x38a   :  { %v1412_v27 = vpop.eup %1411 }
 0x38b   :  { %v681_v28 = vmul.f32 %v1412_v27, %v679_v26  ;;  %vm687_vm6 = vweird.f32 %v1412_v27 }
 0x38c   :  { %vm688_vm8 = vmor %vm686_vm7, %vm687_vm6 }
 0x38d   :  { %v682_v29 = vmul.f32 %v1412_v27, %v681_v28 }
 0x38f   :  { %v683_v30 = vmul.f32 0.5, %v682_v29 }
 0x391   :  { %v684_v31 = vsub.f32 1.5, %v683_v30 }
 0x393   :  { %v685_v32 = vmul.f32 %v1412_v27, %v684_v31 }
 0x395   :  { %v689_v42 = vsel %vm688_vm8, %v1412_v27, %v685_v32 }
 0x396   :  { %v690_v43 = vmul.f32 %v689_v42, %v677_v36  ;;  %v691_v44 = vmul.f32 %v689_v42, %v678_v37 }
 0x398   :  { %v694_v47 = vmul.f32 %v692_v41, %v690_v43  ;;  %v695_v48 = vmul.f32 %v693_v23, %v691_v44 }
 0x39a   :  { %v698_v49 = vadd.f32 %v696_v45, %v694_v47  ;;  %v699_v50 = vadd.f32 %v697_v46, %v695_v48 }
 0x39c   :  { %v700_v51 = vmax.f32 %v698_v49, 0.0  ;;  %v701_v52 = vmax.f32 %v699_v50, 0.0 }
 0x39e   :  { %v702_v53 = vpack.c.bf16 %v700_v51, %v700_v51  ;;  %v703_v35 = vpack.c.bf16 %v701_v52, %v701_v52 }
 0x3a0   :  { %906 = vmatmul.bf16.vlgmr.msrb.gmra.mxu3 %v702_v53  ;;  %919 = vmatmul.bf16.vlgmr.msra.gmra.mxu0 %v703_v35 }
 0x3a1   :  { %932 = vmatmul.bf16.vlgmr.msra.gmra.mxu1 %v702_v53  ;;  %945 = vmatmul.bf16.vlgmr.msra.gmra.mxu2 %v703_v35 }
 0x41d   :  { %v920_v38 = vpop.f32.mrf.mxu0 }
 0x41e   :  { %v933_v39 = vpop.f32.mrf.mxu1 }
 0x41f   :  { %v934_v55 = vadd.f32 %v933_v39, %v737_v40 }
 0x423   :  { %v907_v56 = vpop.f32.mrf.mxu3 }
 0x424   :  { %v908_v57 = vadd.f32 %v907_v56, %v736_v54  ;;  %v946_v58 = vpop.f32.mrf.mxu2 }
 0x425   :  { %v947_v59 = vadd.f32 %v946_v58, %v934_v55  ;;  %v922_v60 = vpop.f32.mrf.mxu0 }
 0x426   :  { %v921_v61 = vadd.f32 %v920_v38, %v908_v57  ;;  %v935_v62 = vpop.f32.mrf.mxu1 }
 0x427   :  { %951 = vst [vmem:[%s1638_s6 + $0x8] sm:$0xff] %v947_v59 }
 0x428   :  { %950 = vst [vmem:[%s1638_s6] sm:$0xff] %v921_v61 }
 0x42b   :  { %v909_v63 = vpop.f32.mrf.mxu3 }
 0x42c   :  { %v948_v0 = vpop.f32.mrf.mxu2 }
 0x42d   :  { %956 = vsyncpa [#allocation3], 1 }
 0x42e   :  { %957 = vsyncpa [#allocation5], 1 }
 0x42f   :  { %958 = vsyncpa [#allocation8], 1 }

</bundles_post_ra>
